<compile_context>
chip_gen: v7x
topology: tpu7x:2x2x1
jax: 0.10.0
libtpu: 0.0.40
codegen_flags: <defaults>
</compile_context>

<pallas_src>
import jax
import jax.numpy as jnp
from jax.experimental import pallas as pl
from jax.experimental.pallas import tpu as pltpu

NUM_NEURONS = 128
LANE = 128       # TPU lane width
SUBLANE = 16     # bf16-safe sublane multiple for the batch tile


def _round_up(x, m):
    return (x + m - 1) // m * m


def _policy_kernel(x_ref, w1_ref, b1_ref, w2_ref, b2_ref, w3_ref, b3_ref, o_ref):
    # Matmuls feed the MXU in bf16 with f32 accumulation; all elementwise math
    # (bias add, relu, tanh, *5) stays in f32.
    x = x_ref[...]                                                  # (TB, S) bf16

    # fc1 + ReLU
    h1 = jnp.dot(x, w1_ref[...], preferred_element_type=jnp.float32) + b1_ref[...]
    h1 = jnp.maximum(h1, 0.0)

    # fc2 + ReLU
    h2 = jnp.dot(h1.astype(jnp.bfloat16), w2_ref[...],
                 preferred_element_type=jnp.float32) + b2_ref[...]
    h2 = jnp.maximum(h2, 0.0)

    # fc3 (lane-padded to 128 outputs) + tanh, scaled by 5.0
    a = jnp.dot(h2.astype(jnp.bfloat16), w3_ref[...],
                preferred_element_type=jnp.float32) + b3_ref[...]
    o_ref[...] = (jnp.tanh(a) * 5.0).astype(o_ref.dtype)


def policy_net_forward(state, params, *, tb_max=512):
    """state: (B, state_dim) f32. params: dict of w1,b1,w2,b2,w3,b3 (f32)."""
    w1, b1 = params["w1"], params["b1"]
    w2, b2 = params["w2"], params["b2"]
    w3, b3 = params["w3"], params["b3"]

    B, state_dim = state.shape
    action_dim = w3.shape[1]

    # --- lane-dense output: zero-pad fc3 out-features to a multiple of 128 ---
    out_pad = _round_up(action_dim, LANE)
    w3p = jnp.pad(w3, ((0, 0), (0, out_pad - action_dim)))
    b3p = jnp.pad(b3, ((0, 0), (0, out_pad - action_dim)))

    # --- batch tiling: TB rows per grid step, batch padded to a TB multiple ---
    # Per-step VMEM (with double-buffering) ~ 2*(TB*state_dim*2B + TB*128*4B),
    # well inside the v7x 32 MiB scoped default for TB <= 2048.
    tb = min(tb_max, _round_up(B, SUBLANE))
    b_pad = _round_up(B, tb)
    x = state if b_pad == B else jnp.pad(state, ((0, b_pad - B), (0, 0)))

    # --- bf16 matmul inputs, f32 bias / accumulation / output ---
    x_bf = x.astype(jnp.bfloat16)
    w1_bf = w1.astype(jnp.bfloat16)
    w2_bf = w2.astype(jnp.bfloat16)
    w3_bf = w3p.astype(jnp.bfloat16)
    b1_f = b1.astype(jnp.float32)
    b2_f = b2.astype(jnp.float32)
    b3_f = b3p.astype(jnp.float32)

    grid = (b_pad // tb,)

    # Weights / biases: constant index_map -> DMA'd once, VMEM-resident
    # across all grid steps; only the activation tiles stream.
    resident = lambda shape: pl.BlockSpec(shape, lambda i: (0, 0))

    flops = 2 * b_pad * (state_dim * NUM_NEURONS
                         + NUM_NEURONS * NUM_NEURONS
                         + NUM_NEURONS * out_pad)
    bytes_accessed = (x_bf.size * 2
                      + (w1_bf.size + w2_bf.size + w3_bf.size) * 2
                      + (b1_f.size + b2_f.size + b3_f.size) * 4
                      + b_pad * out_pad * 4)

    out = pl.pallas_call(
        _policy_kernel,
        out_shape=jax.ShapeDtypeStruct((b_pad, out_pad), jnp.float32),
        grid=grid,
        in_specs=[
            pl.BlockSpec((tb, state_dim), lambda i: (i, 0)),   # state tile
            resident(w1_bf.shape), resident(b1_f.shape),
            resident(w2_bf.shape), resident(b2_f.shape),
            resident(w3_bf.shape), resident(b3_f.shape),
        ],
        out_specs=pl.BlockSpec((tb, out_pad), lambda i: (i, 0)),
        compiler_params=pltpu.CompilerParams(
            dimension_semantics=("parallel",)),
        cost_estimate=pl.CostEstimate(
            flops=flops,
            transcendentals=b_pad * out_pad,
            bytes_accessed=bytes_accessed),
    )(x_bf, w1_bf, b1_f, w2_bf, b2_f, w3_bf, b3_f)

    # Strip batch padding and the lane padding of the final layer.
    return out[:B, :action_dim]


def init_policy_params(key, state_dim, action_dim):
    """Deterministic init mirroring PyTorch: fc1/fc2 default uniform
    (-1/sqrt(fan_in), +1/sqrt(fan_in)); fc3 uniform(-0.003, 0.003)."""
    k1, k2, k3, k4, k5, k6 = jax.random.split(key, 6)

    def lin_init(kw, kb, fan_in, fan_out):
        bound = 1.0 / jnp.sqrt(float(fan_in))
        w = jax.random.uniform(kw, (fan_in, fan_out), jnp.float32, -bound, bound)
        b = jax.random.uniform(kb, (1, fan_out), jnp.float32, -bound, bound)
        return w, b

    w1, b1 = lin_init(k1, k2, state_dim, NUM_NEURONS)
    w2, b2 = lin_init(k3, k4, NUM_NEURONS, NUM_NEURONS)
    w3 = jax.random.uniform(k5, (NUM_NEURONS, action_dim), jnp.float32, -0.003, 0.003)
    b3 = jax.random.uniform(k6, (1, action_dim), jnp.float32, -0.003, 0.003)
    return {"w1": w1, "b1": b1, "w2": w2, "b2": b2, "w3": w3, "b3": b3}


if __name__ == "__main__":
    key = jax.random.PRNGKey(0)
    k_params, k_state = jax.random.split(key)

    batch, state_dim, action_dim = 2, 16, 4
    params = init_policy_params(k_params, state_dim, action_dim)
    state = jax.random.normal(k_state, (batch, state_dim), jnp.float32)

    action = policy_net_forward(state, params)
    jax.block_until_ready(action)
    assert action.shape == (batch, action_dim)

    # Reference with the same bf16-input / f32-accumulate numerics.
    xb = state.astype(jnp.bfloat16)
    w1b = params["w1"].astype(jnp.bfloat16)
    w2b = params["w2"].astype(jnp.bfloat16)
    w3b = params["w3"].astype(jnp.bfloat16)
    h1 = jnp.maximum(jnp.dot(xb, w1b, preferred_element_type=jnp.float32)
                     + params["b1"], 0.0)
    h2 = jnp.maximum(jnp.dot(h1.astype(jnp.bfloat16), w2b,
                             preferred_element_type=jnp.float32)
                     + params["b2"], 0.0)
    ref_bf16 = jnp.tanh(jnp.dot(h2.astype(jnp.bfloat16), w3b,
                                preferred_element_type=jnp.float32)
                        + params["b3"]) * 5.0
    assert jnp.allclose(action, ref_bf16, atol=1e-2, rtol=1e-2), \
        "mismatch vs bf16 reference"

    # Looser check against the full-f32 reference (bf16 weight rounding only).
    h1f = jnp.maximum(state @ params["w1"] + params["b1"], 0.0)
    h2f = jnp.maximum(h1f @ params["w2"] + params["b2"], 0.0)
    ref_f32 = jnp.tanh(h2f @ params["w3"] + params["b3"]) * 5.0
    assert jnp.allclose(action, ref_f32, atol=5e-2, rtol=5e-2), \
        "mismatch vs f32 reference"

    print("KERNEL_OK")
</pallas_src>

<mosaic_0001>
module attributes {stable_mosaic.version = 11 : i64} {
  func.func @_policy_kernel(%arg0: i32, %arg1: memref<16x16xbf16, #tpu.memory_space<vmem>>, %arg2: memref<16x128xbf16, #tpu.memory_space<vmem>>, %arg3: memref<1x128xf32, #tpu.memory_space<vmem>>, %arg4: memref<128x128xbf16, #tpu.memory_space<vmem>>, %arg5: memref<1x128xf32, #tpu.memory_space<vmem>>, %arg6: memref<128x128xbf16, #tpu.memory_space<vmem>>, %arg7: memref<1x128xf32, #tpu.memory_space<vmem>>, %arg8: memref<16x128xf32, #tpu.memory_space<vmem>>) attributes {dimension_semantics = [#tpu.dimension_semantics<parallel>], iteration_bounds = array<i64: 1>, scalar_prefetch = 0 : i64, scratch_operands = 0 : i64, tpu.core_type = #tpu.core_type<tc>, window_params = [{transform_indices = @transform_0, window_bounds = array<i64: 16, 16>}, {pipeline_mode = #tpu.pipeline_mode<synchronous>, transform_indices = @transform_1, window_bounds = array<i64: 16, 128>}, {pipeline_mode = #tpu.pipeline_mode<synchronous>, transform_indices = @transform_2, window_bounds = array<i64: 1, 128>}, {pipeline_mode = #tpu.pipeline_mode<synchronous>, transform_indices = @transform_3, window_bounds = array<i64: 128, 128>}, {pipeline_mode = #tpu.pipeline_mode<synchronous>, transform_indices = @transform_4, window_bounds = array<i64: 1, 128>}, {pipeline_mode = #tpu.pipeline_mode<synchronous>, transform_indices = @transform_5, window_bounds = array<i64: 128, 128>}, {pipeline_mode = #tpu.pipeline_mode<synchronous>, transform_indices = @transform_6, window_bounds = array<i64: 1, 128>}, {transform_indices = @transform_7, window_bounds = array<i64: 16, 128>}]} {
    %c0 = arith.constant 0 : index
    %c0_0 = arith.constant 0 : index
    %0 = vector.load %arg1[%c0, %c0_0] : memref<16x16xbf16, #tpu.memory_space<vmem>>, vector<16x16xbf16>
    %c0_1 = arith.constant 0 : index
    %c0_2 = arith.constant 0 : index
    %1 = vector.load %arg2[%c0_1, %c0_2] : memref<16x128xbf16, #tpu.memory_space<vmem>>, vector<16x128xbf16>
    %cst = arith.constant dense<0.000000e+00> : vector<16x128xf32>
    %2 = tpu.matmul %0, %1, %cst {dimension_numbers = #tpu.dot_dimension_numbers<[1], [0], [0], [1], [0, 0, 1, 1], [], []>} : vector<16x16xbf16>, vector<16x128xbf16>, vector<16x128xf32> -> vector<16x128xf32>
    %c0_3 = arith.constant 0 : index
    %c0_4 = arith.constant 0 : index
    %3 = vector.load %arg3[%c0_3, %c0_4] : memref<1x128xf32, #tpu.memory_space<vmem>>, vector<1x128xf32>
    %4 = vector.broadcast %3 : vector<1x128xf32> to vector<16x128xf32>
    %5 = arith.addf %2, %4 : vector<16x128xf32>
    %cst_5 = arith.constant 0.000000e+00 : f32
    %6 = vector.broadcast %cst_5 : f32 to vector<16x128xf32>
    %7 = arith.maximumf %5, %6 : vector<16x128xf32>
    %8 = arith.truncf %7 : vector<16x128xf32> to vector<16x128xbf16>
    %c0_6 = arith.constant 0 : index
    %c0_7 = arith.constant 0 : index
    %9 = vector.load %arg4[%c0_6, %c0_7] : memref<128x128xbf16, #tpu.memory_space<vmem>>, vector<128x128xbf16>
    %cst_8 = arith.constant dense<0.000000e+00> : vector<16x128xf32>
    %10 = tpu.matmul %8, %9, %cst_8 {dimension_numbers = #tpu.dot_dimension_numbers<[1], [0], [0], [1], [0, 0, 1, 1], [], []>} : vector<16x128xbf16>, vector<128x128xbf16>, vector<16x128xf32> -> vector<16x128xf32>
    %c0_9 = arith.constant 0 : index
    %c0_10 = arith.constant 0 : index
    %11 = vector.load %arg5[%c0_9, %c0_10] : memref<1x128xf32, #tpu.memory_space<vmem>>, vector<1x128xf32>
    %12 = vector.broadcast %11 : vector<1x128xf32> to vector<16x128xf32>
    %13 = arith.addf %10, %12 : vector<16x128xf32>
    %cst_11 = arith.constant 0.000000e+00 : f32
    %14 = vector.broadcast %cst_11 : f32 to vector<16x128xf32>
    %15 = arith.maximumf %13, %14 : vector<16x128xf32>
    %16 = arith.truncf %15 : vector<16x128xf32> to vector<16x128xbf16>
    %c0_12 = arith.constant 0 : index
    %c0_13 = arith.constant 0 : index
    %17 = vector.load %arg6[%c0_12, %c0_13] : memref<128x128xbf16, #tpu.memory_space<vmem>>, vector<128x128xbf16>
    %cst_14 = arith.constant dense<0.000000e+00> : vector<16x128xf32>
    %18 = tpu.matmul %16, %17, %cst_14 {dimension_numbers = #tpu.dot_dimension_numbers<[1], [0], [0], [1], [0, 0, 1, 1], [], []>} : vector<16x128xbf16>, vector<128x128xbf16>, vector<16x128xf32> -> vector<16x128xf32>
    %c0_15 = arith.constant 0 : index
    %c0_16 = arith.constant 0 : index
    %19 = vector.load %arg7[%c0_15, %c0_16] : memref<1x128xf32, #tpu.memory_space<vmem>>, vector<1x128xf32>
    %20 = vector.broadcast %19 : vector<1x128xf32> to vector<16x128xf32>
    %21 = arith.addf %18, %20 : vector<16x128xf32>
    %22 = math.tanh %21 : vector<16x128xf32>
    %cst_17 = arith.constant 5.000000e+00 : f32
    %23 = vector.broadcast %cst_17 : f32 to vector<16x128xf32>
    %24 = arith.mulf %22, %23 : vector<16x128xf32>
    %c0_18 = arith.constant 0 : index
    %c0_19 = arith.constant 0 : index
    %25 = vector.load %arg8[%c0_18, %c0_19] : memref<16x128xf32, #tpu.memory_space<vmem>>, vector<16x128xf32>
    tpu.vector_store %arg8[%c0_18, %c0_19], %24 {strides = array<i32>} : memref<16x128xf32, #tpu.memory_space<vmem>>, vector<16x128xf32>,
    return
  }
  func.func @transform_0(%arg0: i32) -> (i32, i32) {
    %c0_i32 = arith.constant 0 : i32
    %c0_i32_0 = arith.constant 0 : i32
    return %arg0, %c0_i32 : i32, i32
  }
  func.func @transform_1(%arg0: i32) -> (i32, i32) {
    %c0_i32 = arith.constant 0 : i32
    %c0_i32_0 = arith.constant 0 : i32
    %c0_i32_1 = arith.constant 0 : i32
    return %c0_i32, %c0_i32_0 : i32, i32
  }
  func.func @transform_2(%arg0: i32) -> (i32, i32) {
    %c0_i32 = arith.constant 0 : i32
    %c0_i32_0 = arith.constant 0 : i32
    %c0_i32_1 = arith.constant 0 : i32
    return %c0_i32, %c0_i32_0 : i32, i32
  }
  func.func @transform_3(%arg0: i32) -> (i32, i32) {
    %c0_i32 = arith.constant 0 : i32
    %c0_i32_0 = arith.constant 0 : i32
    %c0_i32_1 = arith.constant 0 : i32
    return %c0_i32, %c0_i32_0 : i32, i32
  }
  func.func @transform_4(%arg0: i32) -> (i32, i32) {
    %c0_i32 = arith.constant 0 : i32
    %c0_i32_0 = arith.constant 0 : i32
    %c0_i32_1 = arith.constant 0 : i32
    return %c0_i32, %c0_i32_0 : i32, i32
  }
  func.func @transform_5(%arg0: i32) -> (i32, i32) {
    %c0_i32 = arith.constant 0 : i32
    %c0_i32_0 = arith.constant 0 : i32
    %c0_i32_1 = arith.constant 0 : i32
    return %c0_i32, %c0_i32_0 : i32, i32
  }
  func.func @transform_6(%arg0: i32) -> (i32, i32) {
    %c0_i32 = arith.constant 0 : i32
    %c0_i32_0 = arith.constant 0 : i32
    %c0_i32_1 = arith.constant 0 : i32
    return %c0_i32, %c0_i32_0 : i32, i32
  }
  func.func @transform_7(%arg0: i32) -> (i32, i32) {
    %c0_i32 = arith.constant 0 : i32
    %c0_i32_0 = arith.constant 0 : i32
    return %arg0, %c0_i32 : i32, i32
  }
}

</mosaic_0001>

<bundles_post_ra>
// kernel: tpu_custom_call.1
= control target key start
LH: loop header
LB: loop body
LE: loop exit
PB: predicated region body
PF: predicated region fallthrough
CT: control target
= control target key end

     0   :  { %12 = vsyncpa [#allocation3], 0  ;;  %s810_s0 = inlined_call_operand.hbm [shape: bf16[16,16], index: 0, kind: input, shape index: {}]   ;;  %s811_s1 = inlined_call_operand.hbm [shape: bf16[16,128], index: 1, kind: input, shape index: {}]   ;;  %s812_s2 = inlined_call_operand.vmem [shape: f32[1,128], index: 2, kind: input, shape index: {}]   ;;  %s813_s3 = inlined_call_operand.hbm [shape: bf16[128,128], index: 3, kind: input, shape index: {}]   ;;  %s814_s4 = inlined_call_operand.vmem [shape: f32[1,128], index: 4, kind: input, shape index: {}]   ;;  %s815_s5 = inlined_call_operand.hbm [shape: bf16[128,128], index: 5, kind: input, shape index: {}]   ;;  %s816_s6 = inlined_call_operand.vmem [shape: f32[1,128], index: 6, kind: input, shape index: {}]   ;;  %s817_s7 = inlined_call_operand.hbm [shape: f32[16,128], index: 7, kind: output, shape index: {}]  }
   0x1   :  { %13 = vsyncpa [#allocation6], 0 }
   0x2   :  { %14 = vsyncpa [#allocation9], 0 }
   0x3   :  { %15 = vsyncpa [#allocation4], 0  ;;  %s644_s24 = smov [#allocation5]   ;;  %s645_s26 = smov [#allocation2]  }
   0x4   :  { %s33_s25 = sshll.u32 %s644_s24, 4  ;;  %s21_s27 = sshll.u32 %s645_s26, 4  ;;  %s34_s25 = int_to_ptr.vmem [resolvable:$true] %s33_s25  ;;  %s695_s27 = int_to_ptr.vmem [resolvable:$true] %s21_s27 }
   0x5   :  { %s526_s30 = scalar_lea.hbm %s811_s1, 128 }
   0x6   :  { %p527_p0 = scmp.ne.s32.totalorder %s811_s1, %s526_s30  ;;  %p530_p1 = scmp.lt.u32.totalorder %s526_s30, %s811_s1 }
   0x8   :  { %p532_p2 = pnand %p530_p1, %p527_p0 }
   0xa   :  { %535 = shalt.err (!%p532_p2)
}
   0xb   :  { %s536_s12 = scalar_lea.vmem %s34_s25, 128  ;;  %p541_p4 = scmp.lt.s32.totalorder %s34_s25, %s34_s25 }
   0xc   :  { %p537_p3 = scmp.ne.s32.totalorder %s34_s25, %s536_s12  ;;  %p542_p5 = scmp.lt.s32.totalorder %s536_s12, %s536_s12 }
   0xe   :  { %p543_p6 = por %p542_p5, %p541_p4 }
  0x10   :  { %p544_p7 = pnand %p543_p6, %p537_p3 }
  0x12   :  { %547 = shalt.err (!%p544_p7)
}
  0x13   :  { %s646_s13 = smov 64   ;;  %s647_s14 = smov 4  }
  0x14   :  { %39 = dma.hbm_to_vmem [thread:$0]  %s811_s1, 128, %s34_s25, [#allocation6], %s646_s13, %s646_s13, %s647_s14  }
  0x15   :  { %s548_s19 = scalar_lea.hbm %s810_s0, 128 }
  0x16   :  { %p549_p8 = scmp.ne.s32.totalorder %s810_s0, %s548_s19  ;;  %p552_p9 = scmp.lt.u32.totalorder %s548_s19, %s810_s0 }
  0x18   :  { %p554_p10 = pnand %p552_p9, %p549_p8 }
  0x1a   :  { %557 = shalt.err (!%p554_p10)
}
  0x1b   :  { %s558_s24 = scalar_lea.vmem %s695_s27, 128  ;;  %p563_p12 = scmp.lt.s32.totalorder %s695_s27, %s695_s27 }
  0x1c   :  { %p559_p11 = scmp.ne.s32.totalorder %s695_s27, %s558_s24  ;;  %p564_p13 = scmp.lt.s32.totalorder %s558_s24, %s558_s24 }
  0x1e   :  { %p565_p0 = por %p564_p13, %p563_p12 }
  0x20   :  { %p566_p1 = pnand %p565_p0, %p559_p11 }
  0x22   :  { %569 = shalt.err (!%p566_p1)
}
  0x23   :  { %27 = dma.hbm_to_vmem [thread:$0]  %s810_s0, 128, %s695_s27, [#allocation3], %s646_s13, %s646_s13, %s647_s14  }
  0x24   :  { %s648_s26 = smov [#allocation7]   ;;  %s649_s29 = smov [#allocation8]  }
  0x25   :  { %s47_s28 = sshll.u32 %s648_s26, 4  ;;  %s61_s30 = sshll.u32 %s649_s29, 4  ;;  %s48_s28 = int_to_ptr.vmem [resolvable:$true] %s47_s28  ;;  %s732_s30 = int_to_ptr.vmem [resolvable:$true] %s61_s30 }
  0x26   :  { %s570_s10 = scalar_lea.hbm %s813_s3, 1024 }
  0x27   :  { %p571_p2 = scmp.ne.s32.totalorder %s813_s3, %s570_s10  ;;  %p574_p3 = scmp.lt.u32.totalorder %s570_s10, %s813_s3 }
  0x29   :  { %p576_p4 = pnand %p574_p3, %p571_p2 }
  0x2b   :  { %579 = shalt.err (!%p576_p4)
}
  0x2c   :  { %s580_s0 = scalar_lea.vmem %s48_s28, 1024  ;;  %p585_p6 = scmp.lt.s32.totalorder %s48_s28, %s48_s28 }
  0x2d   :  { %p581_p5 = scmp.ne.s32.totalorder %s48_s28, %s580_s0  ;;  %p586_p7 = scmp.lt.s32.totalorder %s580_s0, %s580_s0 }
  0x2f   :  { %p587_p8 = por %p586_p7, %p585_p6 }
  0x31   :  { %p588_p9 = pnand %p587_p8, %p581_p5 }
  0x33   :  { %591 = shalt.err (!%p588_p9)
}
  0x34   :  { %53 = dma.hbm_to_vmem [thread:$0]  %s813_s3, 1024, %s48_s28, [#allocation6], %s646_s13, %s646_s13, %s647_s14  }
  0x35   :  { %s592_s20 = scalar_lea.hbm %s815_s5, 1024 }
  0x36   :  { %p593_p10 = scmp.ne.s32.totalorder %s815_s5, %s592_s20  ;;  %p596_p11 = scmp.lt.u32.totalorder %s592_s20, %s815_s5 }
  0x38   :  { %p598_p12 = pnand %p596_p11, %p593_p10 }
  0x3a   :  { %601 = shalt.err (!%p598_p12)
}
  0x3b   :  { %s602_s1 = scalar_lea.vmem %s732_s30, 1024  ;;  %p607_p0 = scmp.lt.s32.totalorder %s732_s30, %s732_s30 }
  0x3c   :  { %p603_p13 = scmp.ne.s32.totalorder %s732_s30, %s602_s1  ;;  %p608_p1 = scmp.lt.s32.totalorder %s602_s1, %s602_s1 }
  0x3e   :  { %p609_p2 = por %p608_p1, %p607_p0 }
  0x40   :  { %p610_p3 = pnand %p609_p2, %p603_p13 }
  0x42   :  { %613 = shalt.err (!%p610_p3)
}
  0x43   :  { %67 = dma.hbm_to_vmem [thread:$0]  %s815_s5, 1024, %s732_s30, [#allocation9], %s646_s13, %s646_s13, %s647_s14  }
  0x44   :  { %636 = dma.done.wait [#allocation3], 128  }
  0x45   :  { %637 = vsyncadd [#allocation3], 4294967168 }
  0x46   :  { %638 = dma.done.wait [#allocation6], 1152  }
  0x47   :  { %639 = vsyncadd [#allocation6], 4294966144 }
  0x48   :  { %640 = dma.done.wait [#allocation9], 1024  }
  0x49   :  { %641 = vsyncadd [#allocation9], 4294966272  ;;  %v650_v0 = vmov 0.0   ;;  %vm651_vm0 = vmmov 0   ;;  %v504_v1 = vld [vmem:[#allocation5] sm:$0xff]   ;;  %v505_v2 = vld [vmem:[#allocation2] sm:$0xff]  }
  0x4a   :  { %447 = vmatprep.subr.bf16.mxu0 %v650_v0  ;;  %449 = vmatprep.mubr.msk.bf16.mxu0 %vm651_vm0, %v650_v0  ;;  %vm105_vm1 = vcmask 130048   ;;  %v506_v3 = vld [vmem:[#allocation7] sm:$0xff]   ;;  %v507_v4 = vld [vmem:[#allocation7 + $0x8] sm:$0xff]   ;;  %v508_v5 = vld [vmem:[#allocation7 + $0x10] sm:$0xff]  }
  0x4b   :  { %453 = vmatprep.subr.bf16.mxu1 %v650_v0  ;;  %469 = vmatprep.mubr.msk.bf16.mxu1 %vm651_vm0, %v650_v0  ;;  %v509_v6 = vld [vmem:[#allocation7 + $0x18] sm:$0xff]   ;;  %v510_v7 = vld [vmem:[#allocation7 + $0x20] sm:$0xff]   ;;  %v511_v8 = vld [vmem:[#allocation7 + $0x28] sm:$0xff]  }
  0x4c   :  { %448 = vmatpush3.bf16.msra.mxu0 %v504_v1  ;;  %454 = vmatpush3.bf16.msra.mxu1 %v506_v3  ;;  %v512_v9 = vld [vmem:[#allocation7 + $0x30] sm:$0xff]   ;;  %v513_v10 = vld [vmem:[#allocation7 + $0x38] sm:$0xff]   ;;  %v514_v11 = vld [vmem:[#allocation8] sm:$0xff]  }
  0x4d   :  { %473 = vmatprep.subr.bf16.mxu0 %v650_v0  ;;  %455 = vmatprep.subr.bf16.mxu1 %v650_v0  ;;  %v515_v12 = vld [vmem:[#allocation8 + $0x8] sm:$0xff]   ;;  %v516_v13 = vld [vmem:[#allocation8 + $0x10] sm:$0xff]   ;;  %v517_v14 = vld [vmem:[#allocation8 + $0x18] sm:$0xff]  }
  0x4e   :  { %v518_v15 = vld [vmem:[#allocation8 + $0x20] sm:$0xff]   ;;  %v519_v16 = vld [vmem:[#allocation8 + $0x28] sm:$0xff]   ;;  %v405_v17 = vld [vmem:[%s812_s2] ss:$0 sm:$0xff] }
  0x4f   :  { %450 = vmatmul.mubr.msk.bf16.vlgmr.msra.gmra.mrb[0].mxu0 %vm105_vm1, %v505_v2  ;;  %v520_v27 = vld [vmem:[#allocation8 + $0x30] sm:$0xff]   ;;  %v521_v28 = vld [vmem:[#allocation8 + $0x38] sm:$0xff]  }
  0x50   :  { %489 = vmatprep.mubr.msk.bf16.mxu0 %vm651_vm0, %v650_v0  ;;  %456 = vmatpush3.bf16.msra.mxu1 %v507_v4  ;;  %v409_v29 = vld [vmem:[%s814_s4] ss:$0 sm:$0xff]  ;;  %s652_s4 = smov [#allocation10]  }
  0x51   :  { %457 = vmatprep.subr.bf16.mxu1 %v650_v0  ;;  %474 = vmatpush3.bf16.msra.mxu0 %v514_v11  ;;  %v418_v39 = vld [vmem:[%s816_s6] ss:$0 sm:$0xff]  ;;  %s391_s29 = sshll.u32 %s652_s4, 4  ;;  %s392_s29 = int_to_ptr.vmem [resolvable:$true] %s391_s29 }
  0x52   :  { %475 = vmatprep.subr.bf16.mxu0 %v650_v0  ;;  %s614_s30 = scalar_lea.vmem %s392_s29, 256  ;;  %p619_p5 = scmp.lt.s32.totalorder %s392_s29, %s392_s29 }
  0x53   :  { %p615_p4 = scmp.ne.s32.totalorder %s392_s29, %s614_s30  ;;  %p620_p6 = scmp.lt.s32.totalorder %s614_s30, %s614_s30 }
  0x54   :  { %458 = vmatpush3.bf16.msra.mxu1 %v508_v5 }
  0x55   :  { %459 = vmatprep.subr.bf16.mxu1 %v650_v0  ;;  %476 = vmatpush3.bf16.msra.mxu0 %v515_v12  ;;  %p621_p7 = por %p620_p6, %p619_p5 }
  0x56   :  { %477 = vmatprep.subr.bf16.mxu0 %v650_v0 }
  0x57   :  { %p622_p8 = pnand %p621_p7, %p615_p4 }
  0x58   :  { %460 = vmatpush3.bf16.msra.mxu1 %v509_v6 }
  0x59   :  { %461 = vmatprep.subr.bf16.mxu1 %v650_v0  ;;  %478 = vmatpush3.bf16.msra.mxu0 %v516_v13 }
  0x5a   :  { %479 = vmatprep.subr.bf16.mxu0 %v650_v0 }
  0x5c   :  { %462 = vmatpush3.bf16.msra.mxu1 %v510_v7 }
  0x5d   :  { %463 = vmatprep.subr.bf16.mxu1 %v650_v0  ;;  %480 = vmatpush3.bf16.msra.mxu0 %v517_v14 }
  0x5e   :  { %481 = vmatprep.subr.bf16.mxu0 %v650_v0 }
  0x60   :  { %464 = vmatpush3.bf16.msra.mxu1 %v511_v8 }
  0x61   :  { %465 = vmatprep.subr.bf16.mxu1 %v650_v0  ;;  %482 = vmatpush3.bf16.msra.mxu0 %v518_v15 }
  0x62   :  { %483 = vmatprep.subr.bf16.mxu0 %v650_v0 }
  0x64   :  { %466 = vmatpush3.bf16.msra.mxu1 %v512_v9 }
  0x65   :  { %467 = vmatprep.subr.bf16.mxu1 %v650_v0  ;;  %484 = vmatpush3.bf16.msra.mxu0 %v519_v16 }
  0x66   :  { %485 = vmatprep.subr.bf16.mxu0 %v650_v0 }
  0x68   :  { %468 = vmatpush3.bf16.msra.mxu1 %v513_v10 }
  0x69   :  { %486 = vmatpush3.bf16.msra.mxu0 %v520_v27 }
  0x6a   :  { %487 = vmatprep.subr.bf16.mxu0 %v650_v0 }
  0x6d   :  { %488 = vmatpush3.bf16.msra.mxu0 %v521_v28 }
 0x122   :  { %v143_v18 = vpop.f32.mrb[0].mxu0 }
 0x123   :  { %v144_v19 = vadd.f32 %v405_v17, %v143_v18  ;;  %v451_v20 = vpop.f32.mrb[1].mxu0 }
 0x124   :  { %v146_v21 = vpop.f32.mrb[2].mxu0 }
 0x125   :  { %v147_v22 = vadd.f32 %v405_v17, %v146_v21  ;;  %v452_v23 = vpop.f32.mrb[3].mxu0  ;;  %v150_v24 = vmax.f32 %v144_v19, 0.0 }
 0x127   :  { %v151_v25 = vmax.f32 %v147_v22, 0.0 }
 0x129   :  { %v152_v26 = vpack.c.bf16 %v151_v25, %v150_v24 }
 0x12b   :  { %470 = vmatmul.mubr.bf16.vlgmr.msra.gmra.mrb[0].mxu1 %v152_v26 }
 0x1fe   :  { %v258_v30 = vpop.f32.mrb[0].mxu1 }
 0x1ff   :  { %v259_v31 = vadd.f32 %v409_v29, %v258_v30  ;;  %v471_v32 = vpop.f32.mrb[1].mxu1 }
 0x200   :  { %v261_v33 = vpop.f32.mrb[2].mxu1 }
 0x201   :  { %v262_v34 = vadd.f32 %v409_v29, %v261_v33  ;;  %v472_v35 = vpop.f32.mrb[3].mxu1  ;;  %v265_v36 = vmax.f32 %v259_v31, 0.0 }
 0x203   :  { %v266_v37 = vmax.f32 %v262_v34, 0.0 }
 0x205   :  { %v267_v38 = vpack.c.bf16 %v266_v37, %v265_v36 }
 0x207   :  { %490 = vmatmul.mubr.bf16.vlgmr.msra.gmra.mrb[4].mxu0 %v267_v38 }
 0x2da   :  { %v373_v40 = vpop.f32.mrb[4].mxu0 }
 0x2db   :  { %v374_v41 = vadd.f32 %v418_v39, %v373_v40  ;;  %v491_v42 = vpop.f32.mrb[5].mxu0 }
 0x2dc   :  { %v376_v43 = vpop.f32.mrb[6].mxu0 }
 0x2dd   :  { %522 = vtanh.f32 %v374_v41  ;;  %v377_v44 = vadd.f32 %v418_v39, %v376_v43  ;;  %v492_v45 = vpop.f32.mrb[7].mxu0 }
 0x2df   :  { %524 = vtanh.f32 %v377_v44 }
 0x2e7   :  { %v523_v46 = vpop.eup %522 }
 0x2e8   :  { %v382_v47 = vmul.f32 5.0, %v523_v46 }
 0x2e9   :  { %v525_v48 = vpop.eup %524 }
 0x2ea   :  { %384 = vst [vmem:[#allocation10] sm:$0xff] %v382_v47  ;;  %v383_v49 = vmul.f32 5.0, %v525_v48 }
 0x2ec   :  { %385 = vst [vmem:[#allocation10 + $0x8] sm:$0xff] %v383_v49 }
 0x2ed   :  { %625 = shalt.err (!%p622_p8)
}
 0x2ee   :  { %s626_s9 = scalar_lea.hbm %s817_s7, 256 }
 0x2ef   :  { %p627_p9 = scmp.ne.s32.totalorder %s817_s7, %s626_s9  ;;  %p630_p10 = scmp.lt.u32.totalorder %s626_s9, %s817_s7 }
 0x2f1   :  { %p632_p11 = pnand %p630_p10, %p627_p9 }
 0x2f3   :  { %635 = shalt.err (!%p632_p11)
}
 0x2f4   :  { %s653_s16 = smov 128   ;;  %s654_s0 = smov 8  }
 0x2f5   :  { %397 = dma.vmem_to_hbm [thread:$0]  %s392_s29, 256, %s817_s7, [#allocation4], %s653_s16, %s653_s16, %s654_s0  }
 0x2f6   :  { %642 = dma.done.wait [#allocation4], 256  }
 0x2f7   :  { %643 = vsyncadd [#allocation4], 4294967040 }
 0x2f8   :  { %401 = vsyncpa [#allocation3], 1 }
 0x2f9   :  { %402 = vsyncpa [#allocation6], 1 }
 0x2fa   :  { %403 = vsyncpa [#allocation9], 1 }
 0x2fb   :  { %404 = vsyncpa [#allocation4], 1 }

</bundles_post_ra>
